<compile_context>
chip_gen: v5e
topology: v5e:2x2
jax: 0.10.0
libtpu: 0.0.40
codegen_flags: <defaults>
</compile_context>

<pallas_src>
import jax
import jax.numpy as jnp
from jax.experimental import pallas as pl
from jax.experimental.pallas import tpu as pltpu

_NEG_PAD = -1.0e30   # bias for padded atom columns -> exp() underflows to exactly 0


def _round_up(x, m):
    return ((x + m - 1) // m) * m


def _rainbow_kernel(x_ref, wf_ref, bf_ref, wh_ref, bh_ref, wq_ref, bq_ref,
                    seg_ref, sup_ref, out_ref):
    """One batch tile of the RainbowNet forward, entirely in VMEM.

    3 "real" MXU matmuls (feature, fused hidden, fused head/dueling) plus two
    small helper matmuls for the per-action softmax denominator / expectation.
    """
    x = x_ref[...]                                                            # (TB, in)

    # feature layer (plain nn.Linear, no activation in the reference module)
    feature = jnp.dot(x, wf_ref[...],
                      preferred_element_type=jnp.float32) + bf_ref[...]       # (TB, 128)

    # fused adv/val hidden NoisyLinear layers: one matmul + one ReLU
    hid = jnp.maximum(
        jnp.dot(feature, wh_ref[...],
                preferred_element_type=jnp.float32) + bh_ref[...], 0.0)       # (TB, 256)

    # fused heads + dueling combine:
    #   q_all[:, a*K+k] = val[:, k] + adv[:, a, k] - mean_a adv[:, a, k]
    # (the linear combine is folded into wq / bq at param-prep time; padded
    #  lanes carry a huge-negative bias so they vanish after exp()).
    q_all = jnp.dot(hid, wq_ref[...],
                    preferred_element_type=jnp.float32) + bq_ref[...]         # (TB, AKp)

    # Per-action softmax over the atom axis on the full slab.
    # Shift by the row-global max: exactly equivalent math (the shift is
    # constant within each action's atom group); the only difference vs a
    # per-action max is deep-underflow behaviour, guarded below.
    m = jnp.max(q_all, axis=-1, keepdims=True)                                # (TB, 1)
    e = jnp.exp(q_all - m)                                                    # one EUP push

    # per-action denominators, tiled back over atoms, via block-ones matmul (idle MXU)
    denom = jnp.dot(e, seg_ref[...], preferred_element_type=jnp.float32)      # (TB, AKp)
    denom = jnp.maximum(denom, 1e-30)                                         # underflow guard
    r = pl.reciprocal(denom, approx=True)                                     # EUP vrcp
    r = r * (2.0 - denom * r)                                                 # Newton step -> ~f32 exact

    dist = jnp.maximum(e * r, 0.001)                                          # clamp(min=0.001)

    # expectation sum_k dist[:, a, k] * support[k] via block-diag support matmul,
    # written as one (TB, A) store (pad rows of sup are zero -> no contribution).
    out_ref[...] = jnp.dot(dist, sup_ref[...], preferred_element_type=jnp.float32)


def fuse_params(params, support, n_actions, atom_size):
    """Fold the adv/val layer pair and the dueling combine into fused weights.

    Exactly linear rewrites of the reference forward (no approximation). The
    atom axis is padded to a multiple of 128 lanes; pad columns are inert
    (zero weights, huge-negative bias, zero rows in the softmax helpers).
    """
    A, K = n_actions, atom_size
    AK = A * K
    AKp = _round_up(AK, 128)
    eye_K = jnp.eye(K, dtype=jnp.float32)

    # adv_flat -> q_all : (I_A - 1/A) kron I_K   (identity minus mean-over-actions)
    q_adv = jnp.kron(jnp.eye(A, dtype=jnp.float32) - 1.0 / A, eye_K)          # (AK, AK)
    # val -> q_all : tile the value distribution across actions
    q_val = jnp.kron(jnp.ones((1, A), dtype=jnp.float32), eye_K)              # (K, AK)

    w_hid = jnp.concatenate([params["wah"], params["wvh"]], axis=1)           # (128, 256)
    b_hid = jnp.concatenate([params["bah"], params["bvh"]], axis=1)           # (1, 256)

    w_q = jnp.concatenate([params["wa"] @ q_adv, params["wv"] @ q_val], axis=0)   # (256, AK)
    b_q = params["ba"] @ q_adv + params["bv"] @ q_val                              # (1, AK)

    # block-ones: sums exp() over the atoms of each action, tiled back over atoms
    seg_ones = jnp.kron(jnp.eye(A, dtype=jnp.float32),
                        jnp.ones((K, K), dtype=jnp.float32))                  # (AK, AK)
    # block-diag support: expectation per action
    seg_sup = jnp.kron(jnp.eye(A, dtype=jnp.float32),
                       support.reshape(K, 1).astype(jnp.float32))             # (AK, A)

    # Lane-pad the atom axis to AKp (exact: pad columns never contribute).
    pad = AKp - AK
    if pad:
        w_q = jnp.pad(w_q, ((0, 0), (0, pad)))
        b_q = jnp.pad(b_q, ((0, 0), (0, pad)), constant_values=_NEG_PAD)
        seg_ones = jnp.pad(seg_ones, ((0, pad), (0, pad)))
        seg_sup = jnp.pad(seg_sup, ((0, pad), (0, 0)))

    return dict(wf=params["wf"], bf=params["bf"], w_hid=w_hid, b_hid=b_hid,
                w_q=w_q, b_q=b_q, seg_ones=seg_ones, seg_sup=seg_sup, akp=AKp)


def rainbow_forward(state, params, support, *, n_actions, atom_size, tile_b=512):
    fused = fuse_params(params, support, n_actions, atom_size)
    B, in_dim = state.shape
    AKp = fused["akp"]

    # batch tiling: sublane-aligned tile, pad batch up to a multiple of it
    tb = _round_up(min(tile_b, _round_up(B, 8)), 8)
    Bp = _round_up(B, tb)
    if Bp != B:
        state = jnp.pad(state, ((0, Bp - B), (0, 0)))
    grid = (Bp // tb,)

    weights = (fused["wf"], fused["bf"], fused["w_hid"], fused["b_hid"],
               fused["w_q"], fused["b_q"], fused["seg_ones"], fused["seg_sup"])

    def resident(a):
        # full-array block, constant index_map -> stays VMEM-resident across batch tiles
        return pl.BlockSpec(a.shape, lambda i: (0, 0))

    hid_w = fused["w_hid"].shape[1]
    flops = 2 * Bp * (in_dim * 128 + 128 * hid_w + hid_w * AKp
                      + AKp * AKp + AKp * n_actions)
    transcendentals = 2 * Bp * AKp                      # exp + reciprocal
    bytes_accessed = 4 * (state.size + sum(int(w.size) for w in weights)
                          + Bp * n_actions)

    out = pl.pallas_call(
        _rainbow_kernel,
        out_shape=jax.ShapeDtypeStruct((Bp, n_actions), jnp.float32),
        grid=grid,
        in_specs=[pl.BlockSpec((tb, in_dim), lambda i: (i, 0))]
                 + [resident(w) for w in weights],
        out_specs=pl.BlockSpec((tb, n_actions), lambda i: (i, 0)),
        compiler_params=pltpu.CompilerParams(dimension_semantics=("parallel",)),
        cost_estimate=pl.CostEstimate(flops=flops,
                                      transcendentals=transcendentals,
                                      bytes_accessed=bytes_accessed),
    )(state, *weights)
    return out[:B]


def rainbow_forward_ref(state, params, support):
    """Pure-JAX reference mirroring the PyTorch forward (uses the raw params)."""
    feature = state @ params["wf"] + params["bf"]
    adv_hid = jax.nn.relu(feature @ params["wah"] + params["bah"])
    val_hid = jax.nn.relu(feature @ params["wvh"] + params["bvh"])
    adv = (adv_hid @ params["wa"] + params["ba"]).reshape(state.shape[0], -1,
                                                          support.shape[-1])
    val = (val_hid @ params["wv"] + params["bv"]).reshape(state.shape[0], 1,
                                                          support.shape[-1])
    q_atoms = val + adv - adv.mean(axis=1, keepdims=True)
    dist = jax.nn.softmax(q_atoms, axis=-1)
    dist = jnp.maximum(dist, 0.001)                     # clamp(min=0.001)
    return jnp.sum(dist * support.reshape(1, 1, -1), axis=2)


def init_params(key, input_dim, hidden, n_actions, atom_size):
    ks = jax.random.split(key, 10)

    def lin(kw, kb, fan_in, fan_out):
        bound = 1.0 / jnp.sqrt(fan_in)
        w = jax.random.uniform(kw, (fan_in, fan_out), jnp.float32, -bound, bound)
        b = jax.random.uniform(kb, (1, fan_out), jnp.float32, -bound, bound)
        return w, b

    wf, bf = lin(ks[0], ks[1], input_dim, hidden)
    wah, bah = lin(ks[2], ks[3], hidden, hidden)
    wvh, bvh = lin(ks[4], ks[5], hidden, hidden)
    wa, ba = lin(ks[6], ks[7], hidden, n_actions * atom_size)
    wv, bv = lin(ks[8], ks[9], hidden, atom_size)
    return dict(wf=wf, bf=bf, wah=wah, bah=bah, wvh=wvh, bvh=bvh,
                wa=wa, ba=ba, wv=wv, bv=bv)


if __name__ == "__main__":
    B, INPUT_DIM, HIDDEN = 16, 32, 128
    N_ACTIONS, ATOM_SIZE = 4, 16
    V_MIN, V_MAX = -10.0, 10.0

    key = jax.random.PRNGKey(0)
    k_state, k_params = jax.random.split(key)

    state = jax.random.normal(k_state, (B, INPUT_DIM), jnp.float32)
    params = init_params(k_params, INPUT_DIM, HIDDEN, N_ACTIONS, ATOM_SIZE)
    support = jnp.linspace(V_MIN, V_MAX, ATOM_SIZE, dtype=jnp.float32).reshape(1, ATOM_SIZE)

    q_ref = rainbow_forward_ref(state, params, support)

    # default tiling: whole batch in one tile (grid=(1,))
    q = rainbow_forward(state, params, support,
                        n_actions=N_ACTIONS, atom_size=ATOM_SIZE)
    q = jax.block_until_ready(q)
    assert q.shape == (B, N_ACTIONS)
    assert jnp.allclose(q, q_ref, atol=1e-4, rtol=1e-4), "mismatch vs reference (default tile)"

    # tile_b=8 -> grid=(2,) at this small batch, exercising the batch-tiled path.
    q_tiled = rainbow_forward(state, params, support,
                              n_actions=N_ACTIONS, atom_size=ATOM_SIZE, tile_b=8)
    q_tiled = jax.block_until_ready(q_tiled)
    assert jnp.allclose(q_tiled, q_ref, atol=1e-4, rtol=1e-4), "mismatch vs reference (tiled)"

    print("KERNEL_OK")
</pallas_src>

<mosaic_0001>
module attributes {stable_mosaic.version = 11 : i64} {
  func.func @_rainbow_kernel(%arg0: i32, %arg1: memref<16x32xf32, #tpu.memory_space<vmem>>, %arg2: memref<32x128xf32, #tpu.memory_space<vmem>>, %arg3: memref<1x128xf32, #tpu.memory_space<vmem>>, %arg4: memref<128x256xf32, #tpu.memory_space<vmem>>, %arg5: memref<1x256xf32, #tpu.memory_space<vmem>>, %arg6: memref<256x128xf32, #tpu.memory_space<vmem>>, %arg7: memref<1x128xf32, #tpu.memory_space<vmem>>, %arg8: memref<128x128xf32, #tpu.memory_space<vmem>>, %arg9: memref<128x4xf32, #tpu.memory_space<vmem>>, %arg10: memref<16x4xf32, #tpu.memory_space<vmem>>) attributes {dimension_semantics = [#tpu.dimension_semantics<parallel>], iteration_bounds = array<i64: 1>, scalar_prefetch = 0 : i64, scratch_operands = 0 : i64, tpu.core_type = #tpu.core_type<tc>, window_params = [{transform_indices = @transform_0, window_bounds = array<i64: 16, 32>}, {pipeline_mode = #tpu.pipeline_mode<synchronous>, transform_indices = @transform_1, window_bounds = array<i64: 32, 128>}, {pipeline_mode = #tpu.pipeline_mode<synchronous>, transform_indices = @transform_2, window_bounds = array<i64: 1, 128>}, {pipeline_mode = #tpu.pipeline_mode<synchronous>, transform_indices = @transform_3, window_bounds = array<i64: 128, 256>}, {pipeline_mode = #tpu.pipeline_mode<synchronous>, transform_indices = @transform_4, window_bounds = array<i64: 1, 256>}, {pipeline_mode = #tpu.pipeline_mode<synchronous>, transform_indices = @transform_5, window_bounds = array<i64: 256, 128>}, {pipeline_mode = #tpu.pipeline_mode<synchronous>, transform_indices = @transform_6, window_bounds = array<i64: 1, 128>}, {pipeline_mode = #tpu.pipeline_mode<synchronous>, transform_indices = @transform_7, window_bounds = array<i64: 128, 128>}, {pipeline_mode = #tpu.pipeline_mode<synchronous>, transform_indices = @transform_8, window_bounds = array<i64: 128, 4>}, {transform_indices = @transform_9, window_bounds = array<i64: 16, 4>}]} {
    %c0 = arith.constant 0 : index
    %c0_0 = arith.constant 0 : index
    %0 = vector.load %arg1[%c0, %c0_0] : memref<16x32xf32, #tpu.memory_space<vmem>>, vector<16x32xf32>
    %c0_1 = arith.constant 0 : index
    %c0_2 = arith.constant 0 : index
    %1 = vector.load %arg2[%c0_1, %c0_2] : memref<32x128xf32, #tpu.memory_space<vmem>>, vector<32x128xf32>
    %cst = arith.constant dense<0.000000e+00> : vector<16x128xf32>
    %2 = tpu.matmul %0, %1, %cst {dimension_numbers = #tpu.dot_dimension_numbers<[1], [0], [0], [1], [0, 0, 1, 1], [], []>} : vector<16x32xf32>, vector<32x128xf32>, vector<16x128xf32> -> vector<16x128xf32>
    %c0_3 = arith.constant 0 : index
    %c0_4 = arith.constant 0 : index
    %3 = vector.load %arg3[%c0_3, %c0_4] : memref<1x128xf32, #tpu.memory_space<vmem>>, vector<1x128xf32>
    %4 = vector.broadcast %3 : vector<1x128xf32> to vector<16x128xf32>
    %5 = arith.addf %2, %4 : vector<16x128xf32>
    %c0_5 = arith.constant 0 : index
    %c0_6 = arith.constant 0 : index
    %6 = vector.load %arg4[%c0_5, %c0_6] : memref<128x256xf32, #tpu.memory_space<vmem>>, vector<128x256xf32>
    %cst_7 = arith.constant dense<0.000000e+00> : vector<16x256xf32>
    %7 = tpu.matmul %5, %6, %cst_7 {dimension_numbers = #tpu.dot_dimension_numbers<[1], [0], [0], [1], [0, 0, 1, 1], [], []>} : vector<16x128xf32>, vector<128x256xf32>, vector<16x256xf32> -> vector<16x256xf32>
    %c0_8 = arith.constant 0 : index
    %c0_9 = arith.constant 0 : index
    %8 = vector.load %arg5[%c0_8, %c0_9] : memref<1x256xf32, #tpu.memory_space<vmem>>, vector<1x256xf32>
    %9 = vector.broadcast %8 : vector<1x256xf32> to vector<16x256xf32>
    %10 = arith.addf %7, %9 : vector<16x256xf32>
    %cst_10 = arith.constant 0.000000e+00 : f32
    %11 = vector.broadcast %cst_10 : f32 to vector<16x256xf32>
    %12 = arith.maximumf %10, %11 : vector<16x256xf32>
    %c0_11 = arith.constant 0 : index
    %c0_12 = arith.constant 0 : index
    %13 = vector.load %arg6[%c0_11, %c0_12] : memref<256x128xf32, #tpu.memory_space<vmem>>, vector<256x128xf32>
    %cst_13 = arith.constant dense<0.000000e+00> : vector<16x128xf32>
    %14 = tpu.matmul %12, %13, %cst_13 {dimension_numbers = #tpu.dot_dimension_numbers<[1], [0], [0], [1], [0, 0, 1, 1], [], []>} : vector<16x256xf32>, vector<256x128xf32>, vector<16x128xf32> -> vector<16x128xf32>
    %c0_14 = arith.constant 0 : index
    %c0_15 = arith.constant 0 : index
    %15 = vector.load %arg7[%c0_14, %c0_15] : memref<1x128xf32, #tpu.memory_space<vmem>>, vector<1x128xf32>
    %16 = vector.broadcast %15 : vector<1x128xf32> to vector<16x128xf32>
    %17 = arith.addf %14, %16 : vector<16x128xf32>
    %cst_16 = arith.constant dense<0xFF800000> : vector<16xf32>
    %18 = vector.multi_reduction <maximumf>, %17, %cst_16 [1] : vector<16x128xf32> to vector<16xf32>
    %19 = vector.shape_cast %18 : vector<16xf32> to vector<16x1xf32>
    %20 = vector.broadcast %19 : vector<16x1xf32> to vector<16x128xf32>
    %21 = arith.subf %17, %20 : vector<16x128xf32>
    %22 = math.exp %21 : vector<16x128xf32>
    %c0_17 = arith.constant 0 : index
    %c0_18 = arith.constant 0 : index
    %23 = vector.load %arg8[%c0_17, %c0_18] : memref<128x128xf32, #tpu.memory_space<vmem>>, vector<128x128xf32>
    %cst_19 = arith.constant dense<0.000000e+00> : vector<16x128xf32>
    %24 = tpu.matmul %22, %23, %cst_19 {dimension_numbers = #tpu.dot_dimension_numbers<[1], [0], [0], [1], [0, 0, 1, 1], [], []>} : vector<16x128xf32>, vector<128x128xf32>, vector<16x128xf32> -> vector<16x128xf32>
    %cst_20 = arith.constant 1.000000e-30 : f32
    %25 = vector.broadcast %cst_20 : f32 to vector<16x128xf32>
    %26 = arith.maximumf %24, %25 : vector<16x128xf32>
    %27 = tpu.reciprocal %26 {approx = true} : vector<16x128xf32> -> vector<16x128xf32>
    %28 = arith.mulf %26, %27 : vector<16x128xf32>
    %cst_21 = arith.constant 2.000000e+00 : f32
    %29 = vector.broadcast %cst_21 : f32 to vector<16x128xf32>
    %30 = arith.subf %29, %28 : vector<16x128xf32>
    %31 = arith.mulf %27, %30 : vector<16x128xf32>
    %32 = arith.mulf %22, %31 : vector<16x128xf32>
    %cst_22 = arith.constant 1.000000e-03 : f32
    %33 = vector.broadcast %cst_22 : f32 to vector<16x128xf32>
    %34 = arith.maximumf %32, %33 : vector<16x128xf32>
    %c0_23 = arith.constant 0 : index
    %c0_24 = arith.constant 0 : index
    %35 = vector.load %arg9[%c0_23, %c0_24] : memref<128x4xf32, #tpu.memory_space<vmem>>, vector<128x4xf32>
    %cst_25 = arith.constant dense<0.000000e+00> : vector<16x4xf32>
    %36 = tpu.matmul %34, %35, %cst_25 {dimension_numbers = #tpu.dot_dimension_numbers<[1], [0], [0], [1], [0, 0, 1, 1], [], []>} : vector<16x128xf32>, vector<128x4xf32>, vector<16x4xf32> -> vector<16x4xf32>
    %c0_26 = arith.constant 0 : index
    %c0_27 = arith.constant 0 : index
    %37 = vector.load %arg10[%c0_26, %c0_27] : memref<16x4xf32, #tpu.memory_space<vmem>>, vector<16x4xf32>
    tpu.vector_store %arg10[%c0_26, %c0_27], %36 {strides = array<i32>} : memref<16x4xf32, #tpu.memory_space<vmem>>, vector<16x4xf32>,
    return
  }
  func.func @transform_0(%arg0: i32) -> (i32, i32) {
    %c0_i32 = arith.constant 0 : i32
    %c0_i32_0 = arith.constant 0 : i32
    return %arg0, %c0_i32 : i32, i32
  }
  func.func @transform_1(%arg0: i32) -> (i32, i32) {
    %c0_i32 = arith.constant 0 : i32
    %c0_i32_0 = arith.constant 0 : i32
    %c0_i32_1 = arith.constant 0 : i32
    return %c0_i32, %c0_i32_0 : i32, i32
  }
  func.func @transform_2(%arg0: i32) -> (i32, i32) {
    %c0_i32 = arith.constant 0 : i32
    %c0_i32_0 = arith.constant 0 : i32
    %c0_i32_1 = arith.constant 0 : i32
    return %c0_i32, %c0_i32_0 : i32, i32
  }
  func.func @transform_3(%arg0: i32) -> (i32, i32) {
    %c0_i32 = arith.constant 0 : i32
    %c0_i32_0 = arith.constant 0 : i32
    %c0_i32_1 = arith.constant 0 : i32
    return %c0_i32, %c0_i32_0 : i32, i32
  }
  func.func @transform_4(%arg0: i32) -> (i32, i32) {
    %c0_i32 = arith.constant 0 : i32
    %c0_i32_0 = arith.constant 0 : i32
    %c0_i32_1 = arith.constant 0 : i32
    return %c0_i32, %c0_i32_0 : i32, i32
  }
  func.func @transform_5(%arg0: i32) -> (i32, i32) {
    %c0_i32 = arith.constant 0 : i32
    %c0_i32_0 = arith.constant 0 : i32
    %c0_i32_1 = arith.constant 0 : i32
    return %c0_i32, %c0_i32_0 : i32, i32
  }
  func.func @transform_6(%arg0: i32) -> (i32, i32) {
    %c0_i32 = arith.constant 0 : i32
    %c0_i32_0 = arith.constant 0 : i32
    %c0_i32_1 = arith.constant 0 : i32
    return %c0_i32, %c0_i32_0 : i32, i32
  }
  func.func @transform_7(%arg0: i32) -> (i32, i32) {
    %c0_i32 = arith.constant 0 : i32
    %c0_i32_0 = arith.constant 0 : i32
    %c0_i32_1 = arith.constant 0 : i32
    return %c0_i32, %c0_i32_0 : i32, i32
  }
  func.func @transform_8(%arg0: i32) -> (i32, i32) {
    %c0_i32 = arith.constant 0 : i32
    %c0_i32_0 = arith.constant 0 : i32
    %c0_i32_1 = arith.constant 0 : i32
    return %c0_i32, %c0_i32_0 : i32, i32
  }
  func.func @transform_9(%arg0: i32) -> (i32, i32) {
    %c0_i32 = arith.constant 0 : i32
    %c0_i32_0 = arith.constant 0 : i32
    return %arg0, %c0_i32 : i32, i32
  }
}

</mosaic_0001>

<bundles_post_ra>
// kernel: tpu_custom_call.1
= control target key start
LH: loop header
LB: loop body
LE: loop exit
PB: predicated region body
PF: predicated region fallthrough
CT: control target
= control target key end

     0   :  { %14 = vsyncpa [#allocation3], 0  ;;  %s738_s0 = inlined_call_operand.hbm [shape: f32[16,32], index: 0, kind: input, shape index: {}]   ;;  %s739_s1 = inlined_call_operand.hbm [shape: f32[32,128], index: 1, kind: input, shape index: {}]   ;;  %s740_s2 = inlined_call_operand.vmem [shape: f32[1,128], index: 2, kind: input, shape index: {}]   ;;  %s741_s3 = inlined_call_operand.hbm [shape: f32[128,256], index: 3, kind: input, shape index: {}]   ;;  %s742_s4 = inlined_call_operand.vmem [shape: f32[1,256], index: 4, kind: input, shape index: {}]   ;;  %s743_s5 = inlined_call_operand.hbm [shape: f32[256,128], index: 5, kind: input, shape index: {}]   ;;  %s744_s6 = inlined_call_operand.vmem [shape: f32[1,128], index: 6, kind: input, shape index: {}]   ;;  %s745_s7 = inlined_call_operand.vmem [shape: f32[128,128], index: 7, kind: input, shape index: {}]   ;;  %s746_s8 = inlined_call_operand.vmem [shape: f32[128,4], index: 8, kind: input, shape index: {}]   ;;  %s747_s9 = inlined_call_operand.vmem [shape: f32[16,4], index: 9, kind: output, shape index: {}]  }
   0x1   :  { %15 = vsyncpa [#allocation5], 0 }
   0x2   :  { %16 = vsyncpa [#allocation8], 0  ;;  %s34_s11 = sshll.u32 %s739_s1, 4  ;;  %s555_s12 = smov [#allocation4]   ;;  %s35_s11 = int_to_ptr.hbm [resolvable:$true] %s34_s11 }
   0x3   :  { %s36_s13 = sshll.u32 %s555_s12, 4  ;;  %s21_s16 = sshll.u32 %s738_s0, 4  ;;  %s37_s13 = int_to_ptr.vmem [resolvable:$true] %s36_s13  ;;  %s22_s16 = int_to_ptr.hbm [resolvable:$true] %s21_s16 }
   0x4   :  { %s556_s17 = smov 128   ;;  %s557_s18 = smov 8  }
   0x5   :  { %42 = dma.hbm_to_vmem [thread:$0]  %s35_s11, 512, %s37_s13, [#allocation5], %s556_s17, %s556_s17, %s557_s18  }
   0x6   :  { %s558_s19 = smov [#allocation2]   ;;  %s49_s23 = sshll.u32 %s741_s3, 4  ;;  %s50_s23 = int_to_ptr.hbm [resolvable:$true] %s49_s23 }
   0x7   :  { %s23_s20 = sshll.u32 %s558_s19, 4  ;;  %s559_s1 = smov [#allocation6]   ;;  %s24_s20 = int_to_ptr.vmem [resolvable:$true] %s23_s20 }
   0x8   :  { %29 = dma.hbm_to_vmem [thread:$0]  %s22_s16, 256, %s24_s20, [#allocation3], %s556_s17, %s556_s17, %s557_s18  }
   0x9   :  { %s51_s24 = sshll.u32 %s559_s1, 4  ;;  %s64_s0 = sshll.u32 %s743_s5, 4  ;;  %s52_s24 = int_to_ptr.vmem [resolvable:$true] %s51_s24  ;;  %s65_s0 = int_to_ptr.hbm [resolvable:$true] %s64_s0 }
   0xa   :  { %s560_s27 = smov 256   ;;  %s561_s28 = smov 16  }
   0xb   :  { %57 = dma.hbm_to_vmem [thread:$0]  %s50_s23, 4096, %s52_s24, [#allocation5], %s560_s27, %s560_s27, %s561_s28  }
   0xc   :  { %s562_s29 = smov [#allocation7]  }
   0xd   :  { %s66_s30 = sshll.u32 %s562_s29, 4  ;;  %s67_s30 = int_to_ptr.vmem [resolvable:$true] %s66_s30 }
   0xe   :  { %72 = dma.hbm_to_vmem [thread:$0]  %s65_s0, 4096, %s67_s30, [#allocation8], %s556_s17, %s556_s17, %s557_s18  }
   0xf   :  { %549 = dma.done.wait [#allocation3], 256  }
  0x10   :  { %550 = vsyncadd [#allocation3], 4294967040 }
  0x11   :  { %551 = dma.done.wait [#allocation5], 4608  }
  0x12   :  { %552 = vsyncadd [#allocation5], 4294962688 }
  0x13   :  { %553 = dma.done.wait [#allocation8], 4096  }
  0x14   :  { %554 = vsyncadd [#allocation8], 4294963200  ;;  %v100_v0 = vld [vmem:[#allocation4 + $0x18] sm:$0xff]  ;;  %v99_v1 = vld [vmem:[#allocation4 + $0x10] sm:$0xff]  ;;  %vm105_vm0 = vcmask 261120   ;;  %vm407_vm1 = vcmask 31744  }
  0x15   :  { %124 = vmatpush.msra.mxu0 %v100_v0  ;;  %v98_v2 = vld [vmem:[#allocation4 + $0x8] sm:$0xff]  ;;  %v165_v3 = vld [vmem:[#allocation6 + $0xf0] sm:$0xff]  ;;  %v166_v4 = vld [vmem:[#allocation6 + $0xf8] sm:$0xff] }
  0x16   :  { %v163_v5 = vld [vmem:[#allocation6 + $0xe0] sm:$0xff]  ;;  %173 = vmatpush.msra.mxu1 %v165_v3  ;;  %v164_v6 = vld [vmem:[#allocation6 + $0xe8] sm:$0xff]  ;;  %196 = vmatpush.msra.mxu2 %v166_v4  ;;  %v161_v8 = vld [vmem:[#allocation6 + $0xd0] sm:$0xff] }
  0x17   :  { %125 = vmatpush.msra.mxu0 %v99_v1  ;;  %v97_v7 = vld [vmem:[#allocation4] sm:$0xff]  ;;  %v95_v9 = vld [vmem:[#allocation2] sm:$0xff]  ;;  %v162_v10 = vld [vmem:[#allocation6 + $0xd8] sm:$0xff] }
  0x18   :  { %174 = vmatpush.msra.mxu1 %v163_v5  ;;  %197 = vmatpush.msra.mxu2 %v164_v6  ;;  %v159_v11 = vld [vmem:[#allocation6 + $0xc0] sm:$0xff]  ;;  %v160_v12 = vld [vmem:[#allocation6 + $0xc8] sm:$0xff]  ;;  %v157_v13 = vld [vmem:[#allocation6 + $0xb0] sm:$0xff] }
  0x19   :  { %126 = vmatpush.msra.mxu0 %v98_v2  ;;  %v158_v14 = vld [vmem:[#allocation6 + $0xb8] sm:$0xff]  ;;  %v155_v15 = vld [vmem:[#allocation6 + $0xa0] sm:$0xff]  ;;  %v156_v16 = vld [vmem:[#allocation6 + $0xa8] sm:$0xff] }
  0x1a   :  { %175 = vmatpush.msra.mxu1 %v161_v8  ;;  %198 = vmatpush.msra.mxu2 %v162_v10  ;;  %v153_v17 = vld [vmem:[#allocation6 + $0x90] sm:$0xff]  ;;  %v96_v18 = vld [vmem:[#allocation2 + $0x8] sm:$0xff]  ;;  %v151_v20 = vld [vmem:[#allocation6 + $0x80] sm:$0xff] }
  0x1b   :  { %127 = vmatpush.msra.mxu0 %v97_v7  ;;  %v154_v19 = vld [vmem:[#allocation6 + $0x98] sm:$0xff]  ;;  %v152_v21 = vld [vmem:[#allocation6 + $0x88] sm:$0xff]  ;;  %v149_v22 = vld [vmem:[#allocation6 + $0x70] sm:$0xff] }
  0x1c   :  { %417 = vmatmul.msk.f32.vlgmr.msra.gmra.mxu0 %vm105_vm0, %v95_v9  ;;  %176 = vmatpush.msra.mxu1 %v159_v11  ;;  %v150_v23 = vld [vmem:[#allocation6 + $0x78] sm:$0xff]  ;;  %v147_v24 = vld [vmem:[#allocation6 + $0x60] sm:$0xff]  ;;  %v148_v25 = vld [vmem:[#allocation6 + $0x68] sm:$0xff] }
  0x1d   :  { %199 = vmatpush.msra.mxu2 %v160_v12  ;;  %v145_v26 = vld [vmem:[#allocation6 + $0x50] sm:$0xff]  ;;  %v146_v27 = vld [vmem:[#allocation6 + $0x58] sm:$0xff]  ;;  %v143_v28 = vld [vmem:[#allocation6 + $0x40] sm:$0xff] }
  0x1e   :  { %177 = vmatpush.msra.mxu1 %v157_v13  ;;  %v144_v29 = vld [vmem:[#allocation6 + $0x48] sm:$0xff]  ;;  %v141_v30 = vld [vmem:[#allocation6 + $0x30] sm:$0xff]  ;;  %v142_v31 = vld [vmem:[#allocation6 + $0x38] sm:$0xff] }
  0x1f   :  { %200 = vmatpush.msra.mxu2 %v158_v14  ;;  %v139_v32 = vld [vmem:[#allocation6 + $0x20] sm:$0xff]  ;;  %v140_v33 = vld [vmem:[#allocation6 + $0x28] sm:$0xff]  ;;  %v137_v34 = vld [vmem:[#allocation6 + $0x10] sm:$0xff] }
  0x20   :  { %178 = vmatpush.msra.mxu1 %v155_v15  ;;  %v138_v35 = vld [vmem:[#allocation6 + $0x18] sm:$0xff]  ;;  %v135_v36 = vld [vmem:[#allocation6] sm:$0xff]  ;;  %v136_v37 = vld [vmem:[#allocation6 + $0x8] sm:$0xff] }
  0x21   :  { %201 = vmatpush.msra.mxu2 %v156_v16  ;;  %v238_v38 = vld [vmem:[#allocation7 + $0x78] sm:$0xff]  ;;  %v237_v39 = vld [vmem:[#allocation7 + $0x70] sm:$0xff]  ;;  %v236_v41 = vld [vmem:[#allocation7 + $0x68] sm:$0xff] }
  0x22   :  { %179 = vmatpush.msra.mxu1 %v153_v17  ;;  %259 = vmatpush.msra.mxu3 %v238_v38  ;;  %v254_v40 = vld [vmem:[#allocation7 + $0xf8] sm:$0xff]  ;;  %v253_v42 = vld [vmem:[#allocation7 + $0xf0] sm:$0xff]  ;;  %v252_v43 = vld [vmem:[#allocation7 + $0xe8] sm:$0xff] }
  0x23   :  { %202 = vmatpush.msra.mxu2 %v154_v19  ;;  %282 = vmatpush.msrb.mxu0 %v254_v40  ;;  %v235_v44 = vld [vmem:[#allocation7 + $0x60] sm:$0xff]  ;;  %v234_v46 = vld [vmem:[#allocation7 + $0x58] sm:$0xff]  ;;  %v233_v48 = vld [vmem:[#allocation7 + $0x50] sm:$0xff] }
  0x24   :  { %418 = vmatmul.msk.f32.gmra.mxu0 %vm105_vm0, %v96_v18  ;;  %180 = vmatpush.msra.mxu1 %v151_v20  ;;  %v251_v45 = vld [vmem:[#allocation7 + $0xe0] sm:$0xff]  ;;  %v250_v47 = vld [vmem:[#allocation7 + $0xd8] sm:$0xff]  ;;  %v249_v49 = vld [vmem:[#allocation7 + $0xd0] sm:$0xff] }
  0x25   :  { %203 = vmatpush.msra.mxu2 %v152_v21  ;;  %260 = vmatpush.msra.mxu3 %v237_v39  ;;  %v232_v50 = vld [vmem:[#allocation7 + $0x48] sm:$0xff]  ;;  %v231_v52 = vld [vmem:[#allocation7 + $0x40] sm:$0xff]  ;;  %v230_v54 = vld [vmem:[#allocation7 + $0x38] sm:$0xff] }
  0x26   :  { %181 = vmatpush.msra.mxu1 %v149_v22  ;;  %283 = vmatpush.msrb.mxu0 %v253_v42  ;;  %v248_v51 = vld [vmem:[#allocation7 + $0xc8] sm:$0xff]  ;;  %v247_v53 = vld [vmem:[#allocation7 + $0xc0] sm:$0xff]  ;;  %v246_v55 = vld [vmem:[#allocation7 + $0xb8] sm:$0xff] }
  0x27   :  { %204 = vmatpush.msra.mxu2 %v150_v23  ;;  %261 = vmatpush.msra.mxu3 %v236_v41  ;;  %v229_v56 = vld [vmem:[#allocation7 + $0x30] sm:$0xff]  ;;  %v228_v59 = vld [vmem:[#allocation7 + $0x28] sm:$0xff]  ;;  %v227_v60 = vld [vmem:[#allocation7 + $0x20] sm:$0xff] }
  0x28   :  { %182 = vmatpush.msra.mxu1 %v147_v24  ;;  %284 = vmatpush.msrb.mxu0 %v252_v43  ;;  %v245_v57 = vld [vmem:[#allocation7 + $0xb0] sm:$0xff]  ;;  %v226_v63 = vld [vmem:[#allocation7 + $0x18] sm:$0xff]  ;;  %v244_v3 = vld [vmem:[#allocation7 + $0xa8] sm:$0xff] }
  0x29   :  { %205 = vmatpush.msra.mxu2 %v148_v25  ;;  %262 = vmatpush.msra.mxu3 %v235_v44  ;;  %v443_v58 = vld [vmem:[%s740_s2] ss:$0 sm:$0xff]  ;;  %v224_v4 = vld [vmem:[#allocation7 + $0x8] sm:$0xff]  ;;  %v243_v5 = vld [vmem:[#allocation7 + $0xa0] sm:$0xff] }
  0x2a   :  { %183 = vmatpush.msra.mxu1 %v145_v26  ;;  %285 = vmatpush.msrb.mxu0 %v251_v45  ;;  %v225_v2 = vld [vmem:[#allocation7 + $0x10] sm:$0xff]  ;;  %v223_v6 = vld [vmem:[#allocation7] sm:$0xff]  ;;  %v242_v7 = vld [vmem:[#allocation7 + $0x98] sm:$0xff] }
  0x2b   :  { %206 = vmatpush.msra.mxu2 %v146_v27  ;;  %263 = vmatpush.msra.mxu3 %v234_v46  ;;  %v241_v8 = vld [vmem:[#allocation7 + $0x90] sm:$0xff]  ;;  %v240_v9 = vld [vmem:[#allocation7 + $0x88] sm:$0xff]  ;;  %v239_v10 = vld [vmem:[#allocation7 + $0x80] sm:$0xff] }
  0x2c   :  { %184 = vmatpush.msra.mxu1 %v143_v28  ;;  %286 = vmatpush.msrb.mxu0 %v250_v47  ;;  %v167_v11 = vld [vmem:[%s742_s4] sm:$0x3]  ;;  %v330_v26 = vld [vmem:[%s745_s7 + $0x78] sm:$0xff]  ;;  %v329_v27 = vld [vmem:[%s745_s7 + $0x70] sm:$0xff] }
  0x2d   :  { %207 = vmatpush.msra.mxu2 %v144_v29  ;;  %264 = vmatpush.msra.mxu3 %v233_v48  ;;  %v169_v12 = vperm.slane %v167_v11, 0  ;;  %v170_v16 = vperm.slane %v167_v11, 1  ;;  %v328_v28 = vld [vmem:[%s745_s7 + $0x68] sm:$0xff]  ;;  %v327_v29 = vld [vmem:[%s745_s7 + $0x60] sm:$0xff]  ;;  %v318_v47 = vld [vmem:[%s745_s7 + $0x18] sm:$0xff] }
  0x2e   :  { %185 = vmatpush.msra.mxu1 %v141_v30  ;;  %287 = vmatpush.msrb.mxu0 %v249_v49  ;;  %v326_v30 = vld [vmem:[%s745_s7 + $0x58] sm:$0xff]  ;;  %v320_v45 = vld [vmem:[%s745_s7 + $0x28] sm:$0xff]  ;;  %v319_v46 = vld [vmem:[%s745_s7 + $0x20] sm:$0xff] }
  0x2f   :  { %208 = vmatpush.msra.mxu2 %v142_v31  ;;  %265 = vmatpush.msra.mxu3 %v232_v50  ;;  %v325_v31 = vld [vmem:[%s745_s7 + $0x50] sm:$0xff]  ;;  %v316_v49 = vld [vmem:[%s745_s7 + $0x8] sm:$0xff]  ;;  %v315_v50 = vld [vmem:[%s745_s7] sm:$0xff] }
  0x30   :  { %186 = vmatpush.msra.mxu1 %v139_v32  ;;  %288 = vmatpush.msrb.mxu0 %v248_v51  ;;  %v324_v32 = vld [vmem:[%s745_s7 + $0x48] sm:$0xff]  ;;  %v317_v48 = vld [vmem:[%s745_s7 + $0x10] sm:$0xff]  ;;  %v383_v51 = vld [vmem:[%s746_s8 + $0x78] sm:$0xff] }
  0x31   :  { %209 = vmatpush.msra.mxu2 %v140_v33  ;;  %266 = vmatpush.msra.mxu3 %v231_v52  ;;  %v323_v33 = vld [vmem:[%s745_s7 + $0x40] sm:$0xff]  ;;  %v382_v52 = vld [vmem:[%s746_s8 + $0x70] sm:$0xff] }
  0x32   :  { %187 = vmatpush.msra.mxu1 %v137_v34  ;;  %289 = vmatpush.msrb.mxu0 %v247_v53  ;;  %v322_v34 = vld [vmem:[%s745_s7 + $0x38] sm:$0xff]  ;;  %v381_v53 = vld [vmem:[%s746_s8 + $0x68] sm:$0xff] }
  0x33   :  { %210 = vmatpush.msra.mxu2 %v138_v35  ;;  %267 = vmatpush.msra.mxu3 %v230_v54  ;;  %v444_v35 = vld [vmem:[%s744_s6] ss:$0 sm:$0xff] }
  0x34   :  { %188 = vmatpush.msra.mxu1 %v135_v36  ;;  %290 = vmatpush.msrb.mxu0 %v246_v55  ;;  %v321_v36 = vld [vmem:[%s745_s7 + $0x30] sm:$0xff]  ;;  %v380_v54 = vld [vmem:[%s746_s8 + $0x60] sm:$0xff]  ;;  %v379_v55 = vld [vmem:[%s746_s8 + $0x58] sm:$0xff] }
  0x35   :  { %211 = vmatpush.msra.mxu2 %v136_v37  ;;  %268 = vmatpush.msra.mxu3 %v229_v56  ;;  %v378_v56 = vld [vmem:[%s746_s8 + $0x50] sm:$0xff] }
  0x36   :  { %291 = vmatpush.msrb.mxu0 %v245_v57  ;;  %331 = vmatpush.msrb.mxu1 %v330_v26 }
  0x37   :  { %269 = vmatpush.msra.mxu3 %v228_v59  ;;  %384 = vmatpush.msrb.mxu2 %v383_v51 }
  0x38   :  { %292 = vmatpush.msrb.mxu0 %v244_v3  ;;  %332 = vmatpush.msrb.mxu1 %v329_v27  ;;  %v375_v3 = vld [vmem:[%s746_s8 + $0x38] sm:$0xff] }
  0x39   :  { %270 = vmatpush.msra.mxu3 %v227_v60  ;;  %385 = vmatpush.msrb.mxu2 %v382_v52 }
  0x3a   :  { %293 = vmatpush.msrb.mxu0 %v243_v5  ;;  %333 = vmatpush.msrb.mxu1 %v328_v28  ;;  %v373_v5 = vld [vmem:[%s746_s8 + $0x28] sm:$0xff] }
  0x3b   :  { %271 = vmatpush.msra.mxu3 %v226_v63  ;;  %386 = vmatpush.msrb.mxu2 %v381_v53 }
  0x3c   :  { %294 = vmatpush.msrb.mxu0 %v242_v7  ;;  %334 = vmatpush.msrb.mxu1 %v327_v29  ;;  %v371_v7 = vld [vmem:[%s746_s8 + $0x18] sm:$0xff] }
  0x3d   :  { %272 = vmatpush.msra.mxu3 %v225_v2  ;;  %387 = vmatpush.msrb.mxu2 %v380_v54  ;;  %v376_v2 = vld [vmem:[%s746_s8 + $0x40] sm:$0xff] }
  0x3e   :  { %295 = vmatpush.msrb.mxu0 %v241_v8  ;;  %335 = vmatpush.msrb.mxu1 %v326_v30  ;;  %v370_v8 = vld [vmem:[%s746_s8 + $0x10] sm:$0xff] }
  0x3f   :  { %273 = vmatpush.msra.mxu3 %v224_v4  ;;  %388 = vmatpush.msrb.mxu2 %v379_v55  ;;  %v374_v4 = vld [vmem:[%s746_s8 + $0x30] sm:$0xff] }
  0x40   :  { %296 = vmatpush.msrb.mxu0 %v240_v9  ;;  %336 = vmatpush.msrb.mxu1 %v325_v31  ;;  %v369_v9 = vld [vmem:[%s746_s8 + $0x8] sm:$0xff] }
  0x41   :  { %274 = vmatpush.msra.mxu3 %v223_v6  ;;  %389 = vmatpush.msrb.mxu2 %v378_v56  ;;  %v372_v6 = vld [vmem:[%s746_s8 + $0x20] sm:$0xff] }
  0x42   :  { %297 = vmatpush.msrb.mxu0 %v239_v10  ;;  %337 = vmatpush.msrb.mxu1 %v324_v32  ;;  %v368_v10 = vld [vmem:[%s746_s8] sm:$0xff] }
  0x43   :  { %419 = vmatpush.msrb.mxu3 %v330_v26 }
  0x44   :  { %338 = vmatpush.msrb.mxu1 %v323_v33 }
  0x45   :  { %420 = vmatpush.msrb.mxu3 %v329_v27 }
  0x46   :  { %339 = vmatpush.msrb.mxu1 %v322_v34 }
  0x47   :  { %421 = vmatpush.msrb.mxu3 %v328_v28 }
  0x48   :  { %340 = vmatpush.msrb.mxu1 %v321_v36 }
  0x49   :  { %422 = vmatpush.msrb.mxu3 %v327_v29 }
  0x4a   :  { %341 = vmatpush.msrb.mxu1 %v320_v45 }
  0x4b   :  { %423 = vmatpush.msrb.mxu3 %v326_v30 }
  0x4c   :  { %342 = vmatpush.msrb.mxu1 %v319_v46 }
  0x4d   :  { %424 = vmatpush.msrb.mxu3 %v325_v31 }
  0x4e   :  { %343 = vmatpush.msrb.mxu1 %v318_v47 }
  0x4f   :  { %425 = vmatpush.msrb.mxu3 %v324_v32 }
  0x50   :  { %344 = vmatpush.msrb.mxu1 %v317_v48 }
  0x51   :  { %426 = vmatpush.msrb.mxu3 %v323_v33 }
  0x52   :  { %345 = vmatpush.msrb.mxu1 %v316_v49 }
  0x53   :  { %427 = vmatpush.msrb.mxu3 %v322_v34 }
  0x54   :  { %346 = vmatpush.msrb.mxu1 %v315_v50 }
  0x55   :  { %428 = vmatpush.msrb.mxu3 %v321_v36 }
  0x57   :  { %429 = vmatpush.msrb.mxu3 %v320_v45 }
  0x59   :  { %430 = vmatpush.msrb.mxu3 %v319_v46 }
  0x5b   :  { %431 = vmatpush.msrb.mxu3 %v318_v47 }
  0x5d   :  { %432 = vmatpush.msrb.mxu3 %v317_v48 }
  0x5f   :  { %433 = vmatpush.msrb.mxu3 %v316_v49 }
  0x61   :  { %434 = vmatpush.msrb.mxu3 %v315_v50 }
  0x99   :  { %v129_v61 = vpop.f32.mrf.mxu0 }
  0x9a   :  { %v130_v62 = vadd.f32 %v443_v58, %v129_v61 }
  0x9c   :  { %189 = vmatmul.f32.vlgmr.msra.gmra.mxu1 %v130_v62  ;;  %212 = vmatmul.f32.vlgmr.msra.gmra.mxu2 %v130_v62 }
  0xa1   :  { %v132_v0 = vpop.f32.mrf.mxu0 }
  0xa2   :  { %v133_v1 = vadd.f32 %v443_v58, %v132_v0 }
  0xa4   :  { %192 = vmatmul.f32.gmra.mxu1 %v133_v1  ;;  %215 = vmatmul.f32.gmra.mxu2 %v133_v1  ;;  %v377_v1 = vld [vmem:[%s746_s8 + $0x48] sm:$0xff] }
  0xa5   :  { %390 = vmatpush.msrb.mxu2 %v377_v1 }
  0xa7   :  { %391 = vmatpush.msrb.mxu2 %v376_v2 }
  0xa9   :  { %392 = vmatpush.msrb.mxu2 %v375_v3 }
  0xab   :  { %393 = vmatpush.msrb.mxu2 %v374_v4 }
  0xad   :  { %394 = vmatpush.msrb.mxu2 %v373_v5 }
  0xaf   :  { %395 = vmatpush.msrb.mxu2 %v372_v6 }
  0xb1   :  { %396 = vmatpush.msrb.mxu2 %v371_v7 }
  0xb3   :  { %397 = vmatpush.msrb.mxu2 %v370_v8 }
  0xb5   :  { %398 = vmatpush.msrb.mxu2 %v369_v9 }
  0xb7   :  { %399 = vmatpush.msrb.mxu2 %v368_v10 }
 0x119   :  { %v190_v13 = vpop.f32.mrf.mxu1 }
 0x11a   :  { %v191_v14 = vadd.f32 %v190_v13, %v169_v12 }
 0x11c   :  { %v219_v15 = vmax.f32 %v191_v14, 0.0 }
 0x11e   :  { %275 = vmatmul.f32.vlgmr.msra.gmra.mxu3 %v219_v15 }
 0x11f   :  { %v213_v17 = vpop.f32.mrf.mxu2 }
 0x120   :  { %v214_v18 = vadd.f32 %v213_v17, %v170_v16 }
 0x121   :  { %v193_v19 = vpop.f32.mrf.mxu1 }
 0x122   :  { %v220_v20 = vmax.f32 %v214_v18, 0.0  ;;  %v194_v21 = vadd.f32 %v193_v19, %v169_v12 }
 0x124   :  { %v221_v22 = vmax.f32 %v194_v21, 0.0  ;;  %298 = vmatmul.f32.vlgmr.msrb.gmra.mxu0 %v220_v20 }
 0x126   :  { %278 = vmatmul.f32.gmra.mxu3 %v221_v22 }
 0x127   :  { %v216_v23 = vpop.f32.mrf.mxu2 }
 0x128   :  { %v217_v24 = vadd.f32 %v216_v23, %v170_v16 }
 0x12a   :  { %v222_v25 = vmax.f32 %v217_v24, 0.0 }
 0x12c   :  { %301 = vmatmul.f32.gmra.mxu0 %v222_v25 }
 0x1a1   :  { %v276_v37 = vpop.f32.mrf.mxu3  ;;  %v299_v38 = vpop.f32.mrf.mxu0 }
 0x1a2   :  { %v277_v39 = vadd.f32 %v444_v35, %v276_v37 }
 0x1a4   :  { %v300_v40 = vadd.f32 %v299_v38, %v277_v39 }
 0x1a6   :  { %305 = vmax.xlane.f32.xlu0 %v300_v40 }
 0x1a9   :  { %v279_v41 = vpop.f32.mrf.mxu3  ;;  %v302_v43 = vpop.f32.mrf.mxu0 }
 0x1aa   :  { %v280_v42 = vadd.f32 %v444_v35, %v279_v41 }
 0x1ac   :  { %v303_v44 = vadd.f32 %v302_v43, %v280_v42 }
 0x1ae   :  { %307 = vmax.xlane.f32.xlu0 %v303_v44 }
 0x219   :  { %v306_v57 = vpop.xlane.xlu0 %305 }
 0x21a   :  { %v309_v58 = vsub.f32 %v300_v40, %v306_v57 }
 0x21c   :  { %v311_v59 = vmul.f32 1.442695, %v309_v58 }
 0x21e   :  { %445 = vpow2.f32 %v311_v59 }
 0x221   :  { %v308_v60 = vpop.xlane.xlu0 %307 }
 0x222   :  { %v310_v61 = vsub.f32 %v303_v44, %v308_v60 }
 0x224   :  { %v446_v62 = vpop.eup %445  ;;  %v313_v63 = vmul.f32 1.442695, %v310_v61 }
 0x225   :  { %347 = vmatmul.f32.vlgmr.msrb.gmra.mxu1 %v446_v62 }
 0x226   :  { %447 = vpow2.f32 %v313_v63 }
 0x22c   :  { %v448_v0 = vpop.eup %447 }
 0x22d   :  { %350 = vmatmul.f32.vlgmr.msrb.gmra.mxu3 %v448_v0 }
 0x2a2   :  { %v348_v11 = vpop.f32.mrf.mxu1 }
 0x2a3   :  { %v354_v12 = vmax.f32 %v348_v11, 1e-30 }
 0x2a5   :  { %449 = vrcp.f32 %v354_v12 }
 0x2ab   :  { %v450_v13 = vpop.eup %449 }
 0x2ac   :  { %v358_v14 = vmul.f32 %v450_v13, %v354_v12 }
 0x2ae   :  { %v360_v15 = vsub.f32 2.0, %v358_v14 }
 0x2b0   :  { %v362_v16 = vmul.f32 %v450_v13, %v360_v15  ;;  %v351_v17 = vpop.f32.mrf.mxu3 }
 0x2b1   :  { %v355_v18 = vmax.f32 %v351_v17, 1e-30 }
 0x2b2   :  { %v364_v19 = vmul.f32 %v446_v62, %v362_v16 }
 0x2b3   :  { %451 = vrcp.f32 %v355_v18 }
 0x2b4   :  { %v366_v20 = vmax.f32 %v364_v19, 0.001 }
 0x2b6   :  { %400 = vmatmul.f32.vlgmr.msrb.gmra.mxu2 %v366_v20 }
 0x2b9   :  { %v452_v21 = vpop.eup %451 }
 0x2ba   :  { %v359_v22 = vmul.f32 %v452_v21, %v355_v18 }
 0x2bc   :  { %v361_v23 = vsub.f32 2.0, %v359_v22 }
 0x2be   :  { %v363_v24 = vmul.f32 %v452_v21, %v361_v23 }
 0x2c0   :  { %v365_v25 = vmul.f32 %v448_v0, %v363_v24 }
 0x2c2   :  { %v367_v26 = vmax.f32 %v365_v25, 0.001 }
 0x2c4   :  { %403 = vmatmul.f32.gmra.mxu2 %v367_v26 }
 0x339   :  { %v401_v27 = vpop.f32.mrf.mxu2 }
 0x33a   :  { %408 = vst.msk [vmem:[%s747_s9] sm:$0xff] %vm407_vm1, %v401_v27 }
 0x347   :  { %v404_v28 = vpop.f32.mrf.mxu2 }
 0x348   :  { %409 = vst.msk [vmem:[%s747_s9 + $0x8] sm:$0xff] %vm407_vm1, %v404_v28 }
 0x349   :  { %414 = vsyncpa [#allocation3], 1 }
 0x34a   :  { %415 = vsyncpa [#allocation5], 1 }
 0x34b   :  { %416 = vsyncpa [#allocation8], 1 }

</bundles_post_ra>
